<compile_context>
chip_gen: v6e
topology: v6e:2x2x1
jax: 0.10.0
libtpu: 0.0.40
codegen_flags: <defaults>
</compile_context>

<pallas_src>
import math

import jax
import jax.numpy as jnp
from jax.experimental import pallas as pl
from jax.experimental.pallas import tpu as pltpu

LANES = 512                    # lane-dense last dim (multiple of 128)
TARGET_BLOCK_BYTES = 8 << 20   # ~8 MiB per block
VMEM_LIMIT_BYTES = 48 << 20    # 2 arrays x 2 buffers x 8 MiB = 32 MiB + headroom
SMALL_TOTAL_ELEMS = 1 << 16    # below this, plain XLA fusion beats a kernel launch


def _pointwise(x):
    # ((x*2 + 3) - 1)^2 == (2x + 2)^2 ; compute in f32, cast at the caller.
    t = x.astype(jnp.float32) * 2.0 + 2.0
    return t * t


def _elementwise_kernel(x_ref, o_ref):
    o_ref[...] = _pointwise(x_ref[...]).astype(o_ref.dtype)


def _sublanes_for(dtype):
    # Sub-32-bit dtypes pack along sublanes: f32 -> 8, bf16 -> 16, int8 -> 32.
    return max(8, 32 // jnp.dtype(dtype).itemsize)


def _round_up(n, m):
    return ((n + m - 1) // m) * m


def _round_down(n, m):
    return (n // m) * m


def _run_pallas_2d(x2d):
    rows, lanes = x2d.shape
    dtype = x2d.dtype
    itemsize = jnp.dtype(dtype).itemsize
    sub = _sublanes_for(dtype)

    # Largest block that keeps double-buffered (in + out) VMEM use well under
    # the explicit limit; keep at least ~4 grid steps for v7x's 2 TensorCores.
    max_tile_rows = max(sub, _round_down(TARGET_BLOCK_BYTES // (lanes * itemsize), sub))
    tile_rows = max(sub, min(max_tile_rows, _round_up(pl.cdiv(rows, 4), sub)))

    grid = (pl.cdiv(rows, tile_rows),)   # Pallas masks the ragged last block
    return pl.pallas_call(
        _elementwise_kernel,
        out_shape=jax.ShapeDtypeStruct((rows, lanes), dtype),
        grid=grid,
        in_specs=[pl.BlockSpec((tile_rows, lanes), lambda i: (i, 0))],
        out_specs=pl.BlockSpec((tile_rows, lanes), lambda i: (i, 0)),
        compiler_params=pltpu.CompilerParams(
            dimension_semantics=("parallel",),
            vmem_limit_bytes=VMEM_LIMIT_BYTES,
        ),
    )(x2d)


def pt_module_forward(x: jax.Array) -> jax.Array:
    orig_shape = x.shape
    dtype = x.dtype
    total = math.prod(orig_shape)

    # Fast path: tiny tensors are cheaper as a fused XLA elementwise op.
    if total < SMALL_TOTAL_ELEMS:
        return _pointwise(x).astype(dtype)

    x_flat = x.reshape(-1)
    rem = total % LANES
    main_len = total - rem

    if rem == 0:
        # Zero-copy reshape to a lane-dense 2D view; no pad/slice traffic.
        out2d = _run_pallas_2d(x_flat.reshape(main_len // LANES, LANES))
        return out2d.reshape(orig_shape)

    # Ragged path: kernel on the aligned prefix + tiny (< LANES elems) jnp tail.
    out_main = _run_pallas_2d(x_flat[:main_len].reshape(main_len // LANES, LANES))
    out_tail = _pointwise(x_flat[main_len:]).astype(dtype)
    return jnp.concatenate([out_main.reshape(-1), out_tail]).reshape(orig_shape)


if __name__ == "__main__":
    def reference(x):
        # Mirror the PyTorch module step by step (the loop subtracts 1 exactly
        # once from every batch slice).
        out = x * 2.0
        out = out + 3.0
        out = out - 1.0
        return out ** 2

    key = jax.random.PRNGKey(0)
    k0, k1, k2 = jax.random.split(key, 3)

    # Small NCHW input consistent with the module's forward (fast path).
    x_small = jax.random.normal(k0, (2, 4, 16, 16), dtype=jnp.float32)
    y_small = jax.block_until_ready(pt_module_forward(x_small))
    assert y_small.shape == x_small.shape and y_small.dtype == x_small.dtype
    assert jnp.allclose(y_small, reference(x_small), atol=1e-5, rtol=1e-5)

    # Aligned Pallas path (element count is a multiple of LANES).
    x_big = jax.random.normal(k1, (4, 32, 32, 32), dtype=jnp.float32)
    y_big = jax.block_until_ready(pt_module_forward(x_big))
    assert y_big.shape == x_big.shape and y_big.dtype == x_big.dtype
    assert jnp.allclose(y_big, reference(x_big), atol=1e-5, rtol=1e-5)

    # Ragged Pallas path (element count not a multiple of LANES).
    x_rag = jax.random.normal(k2, (3, 29, 31, 37), dtype=jnp.float32)
    y_rag = jax.block_until_ready(pt_module_forward(x_rag))
    assert y_rag.shape == x_rag.shape and y_rag.dtype == x_rag.dtype
    assert jnp.allclose(y_rag, reference(x_rag), atol=1e-5, rtol=1e-5)

    print("KERNEL_OK")
</pallas_src>

<mosaic_0001>
module attributes {stable_mosaic.version = 11 : i64} {
  func.func @_elementwise_kernel(%arg0: i32, %arg1: memref<64x512xf32, #tpu.memory_space<vmem>>, %arg2: memref<64x512xf32, #tpu.memory_space<vmem>>) attributes {dimension_semantics = [#tpu.dimension_semantics<parallel>], iteration_bounds = array<i64: 4>, scalar_prefetch = 0 : i64, scratch_operands = 0 : i64, tpu.core_type = #tpu.core_type<tc>, window_params = [{transform_indices = @transform_0, window_bounds = array<i64: 64, 512>}, {transform_indices = @transform_1, window_bounds = array<i64: 64, 512>}]} {
    %c0 = arith.constant 0 : index
    %c0_0 = arith.constant 0 : index
    %0 = vector.load %arg1[%c0, %c0_0] : memref<64x512xf32, #tpu.memory_space<vmem>>, vector<64x512xf32>
    %cst = arith.constant 2.000000e+00 : f32
    %1 = vector.broadcast %cst : f32 to vector<64x512xf32>
    %2 = arith.mulf %0, %1 : vector<64x512xf32>
    %cst_1 = arith.constant 2.000000e+00 : f32
    %3 = vector.broadcast %cst_1 : f32 to vector<64x512xf32>
    %4 = arith.addf %2, %3 : vector<64x512xf32>
    %5 = arith.mulf %4, %4 : vector<64x512xf32>
    %c0_2 = arith.constant 0 : index
    %c0_3 = arith.constant 0 : index
    %6 = vector.load %arg2[%c0_2, %c0_3] : memref<64x512xf32, #tpu.memory_space<vmem>>, vector<64x512xf32>
    tpu.vector_store %arg2[%c0_2, %c0_3], %5 {strides = array<i32>} : memref<64x512xf32, #tpu.memory_space<vmem>>, vector<64x512xf32>,
    return
  }
  func.func @transform_0(%arg0: i32) -> (i32, i32) {
    %c0_i32 = arith.constant 0 : i32
    %c0_i32_0 = arith.constant 0 : i32
    return %arg0, %c0_i32 : i32, i32
  }
  func.func @transform_1(%arg0: i32) -> (i32, i32) {
    %c0_i32 = arith.constant 0 : i32
    %c0_i32_0 = arith.constant 0 : i32
    return %arg0, %c0_i32 : i32, i32
  }
}

</mosaic_0001>

<bundles_post_ra>
// kernel: tpu_custom_call.1
= control target key start
LH: loop header
LB: loop body
LE: loop exit
PB: predicated region body
PF: predicated region fallthrough
CT: control target
= control target key end

     0   :  { %6 = vsyncpa [#allocation3], 0  ;;  %s791_s0 = inlined_call_operand.hbm [shape: f32[256,512], index: 0, kind: input, shape index: {}]   ;;  %s792_s1 = inlined_call_operand.hbm [shape: f32[256,512], index: 1, kind: output, shape index: {}]  }
   0x1   :  { %8 = vsyncpa [#allocation3 + $0x1], 0 }
   0x2   :  { %9 = vsyncpa [#allocation4], 0 }
   0x3   :  { %11 = vsyncpa [#allocation4 + $0x1], 0  ;;  %s566_s6 = smov 0   ;;  %s568_s7 = smov 0  }
   0x4   :  { %s570_s8 = smov 0   ;;  %s572_s9 = smov 0  }
   0x5 LB: > { %s587_s10 = sadd.s32 4294967295, %s548_s9   ;;  %s386_s11 = sadd.s32 4294967294, %s548_s9   ;;  %s548_s9 = sphi %s572_s9, %s806_s9   ;;  %s544_s8 = sphi %s570_s8, %s805_s8   ;;  %s540_s7 = sphi %s568_s7, %s804_s7   ;;  %s536_s6 = sphi %s566_s6, %s803_s6  }
   0x6   : > { %s591_s12 = sadd.s32 1, %s548_s9   ;;  %s24_s13 = sadd.s32 1, %s544_s8 }
   0x7   : > { %s21_s14 = ssub.s32 %s548_s9, %s591_s12  ;;  %p31_p0 = scmp.ne.s32.totalorder %s544_s8, %s540_s7 }
   0x8   : > { %p22_p1 = scmp.eq.s32.totalorder %s21_s14, 0  ;;  %p32_p2 = scmp.eq.s32.totalorder %s548_s9, 0 }
   0x9   : > { %p37_p3 = scmp.ne.s32.totalorder %s540_s7, %s536_s6  ;;  %p38_p4 = scmp.eq.s32.totalorder %s587_s10, 0 }
   0xa   : > { %s603_s15 = scalar_select %p22_p1, %s544_s8, %s24_s13  }
   0xb   : > { %p605_p5 = por %p32_p2, %p31_p0  ;;  %p609_p6 = por %p38_p4, %p37_p3 }
   0xc   : > { %p61_p7 = scmp.eq.s32.totalorder %s587_s10, 3  ;;  %p67_p8 = scmp.eq.s32.totalorder %s386_s11, 3 }
   0xd   : > { %s796_s17 = scalar_select %p609_p6, 1, 0 }
   0xe   : > { %p418_p9 = scmp.lt.s32.totalorder %s548_s9, 4  ;;  %p615_p10 = por %p61_p7, %p31_p0 }
   0xf   : > { %p619_p11 = por %p67_p8, %p37_p3  ;;  %s87_s20 = sand.u32 1, %s544_s8  }
  0x10   : > { %s797_s18 = scalar_select %p615_p10, 1, 0 }
  0x11   : > { %s798_s19 = scalar_select %p619_p11, 1, 0 }
  0x12   : > { %s403_s21 = sshll.u32 %s548_s9, 12  ;;  %s389_s22 = sshll.u32 %s87_s20, 8 }
  0x13   : > { %s628_s25 = scalar_lea.hbm %s791_s0, %s403_s21  ;;  %s91_s26 = scalar_lea.vmem [#allocation2], %s389_s22 }
  0x14   : > { %s99_s27 = sshll.u32 %s91_s26, 4  ;;  %p632_p12 = pnand %p418_p9, %p605_p5  ;;  %s636_s27 = int_to_ptr.vmem [resolvable:$true] %s99_s27 }
  0x15   : > { %s638_s29 = scalar_lea.sflag [#allocation3], %s87_s20  ;;  %s456_s30 = scalar_lea.hbm %s628_s25, 4096 }
  0x16   : > { %p457_p13 = scmp.ne.s32.totalorder %s628_s25, %s456_s30  ;;  %p458_p0 = pneg %p632_p12 }
  0x17   : > { %s461_s4 = scalar_lea.hbm %s791_s0, 16384  ;;  %p462_p3 = scmp.lt.s32.totalorder %s628_s25, %s791_s0 }
  0x18   : > { %p459_p1 = pnand %p458_p0, %p457_p13  ;;  %p463_p4 = scmp.lt.s32.totalorder %s461_s4, %s456_s30 }
  0x1a   : > { %p460_p2 = pneg %p459_p1  ;;  %p464_p5 = por %p463_p4, %p462_p3 }
  0x1c   : > { %p465_p7 = pnand %p464_p5, %p460_p2 }
  0x1e   : > { %468 = shalt.err (!%p465_p7)
}
  0x1f   : > { %s469_s13 = scalar_lea.vmem %s636_s27, 4096  ;;  %s550_s14 = smov [#allocation2]  }
  0x20   : > { %p470_p8 = scmp.ne.s32.totalorder %s636_s27, %s469_s13  ;;  %s474_s16 = sshll.u32 %s550_s14, 4  ;;  %s475_s16 = int_to_ptr.vmem [resolvable:$false] %s474_s16 }
  0x21   : > { %s476_s20 = scalar_lea.vmem %s475_s16, 8192  ;;  %p477_p1 = scmp.lt.s32.totalorder %s636_s27, %s475_s16 }
  0x22   : > { %p472_p9 = pnand %p470_p8, %p458_p0  ;;  %p478_p11 = scmp.lt.s32.totalorder %s476_s20, %s469_s13 }
  0x24   : > { %p473_p13 = pneg %p472_p9  ;;  %p479_p10 = por %p478_p11, %p477_p1 }
  0x26   : > { %p480_p6 = pnand %p479_p10, %p473_p13 }
  0x28   : > { %483 = shalt.err (!%p480_p6)
}
  0x29   : > { %s551_s21 = smov 512   ;;  %s552_s22 = smov 32  }
  0x2a   : > { %413 = dma.hbm_to_vmem [thread:$0]  (!%p632_p12), %s628_s25, 4096, %s636_s27, %s638_s29, %s551_s21, %s551_s21, %s552_s22  }
  0x2b   : > { %p393_p0 = scmp.ge.s32.totalorder %s548_s9, 1  ;;  %p107_p2 = scmp.lt.s32.totalorder %s548_s9, 5 }
  0x2d   : > { %p108_p3 = pnand %p393_p0, %p107_p2 }
  0x2e   : > { %s662_s23 = sand.u32 (!%p108_p3), 1, %s540_s7   ;;  %p800_p6 = scmp.ne.s32.totalorder (!%p108_p3), %s796_s17, 0 }
  0x2f   : > { %111 = sbr.rel (%p108_p3) target bundleno = 95 (0x5f), region = 24  ;;  %s394_s24 = sshll.u32 (!%p108_p3), %s662_s23, 8 }
  0x30   : > { %s114_s26 = scalar_lea.sflag (!%p108_p3), [#allocation3], %s662_s23  ;;  %s668_s30 = scalar_lea.vmem (!%p108_p3), [#allocation2], %s394_s24 }
  0x34   : > { %527 = dma.done.wait (%p800_p6), %s114_s26, 4096  }
  0x35   : > { %529 = vsyncadd (%p800_p6), %s114_s26, 4294963200  ;;  %v138_v0 = vld [vmem:[%s668_s30] sm:$0xff]  ;;  %v139_v1 = vld [vmem:[%s668_s30 + $0x8] sm:$0xff]  ;;  %s691_s17 = scalar_lea.vmem [#allocation5], %s394_s24  ;;  %s405_s25 = sshll.u32 %s587_s10, 12 }
  0x36   : > { %v140_v2 = vld [vmem:[%s668_s30 + $0x10] sm:$0xff]  ;;  %v170_v3 = vmul.f32 2.0, %v138_v0  ;;  %v171_v4 = vmul.f32 2.0, %v139_v1  ;;  %v141_v6 = vld [vmem:[%s668_s30 + $0x18] sm:$0xff]  ;;  %v142_v7 = vld [vmem:[%s668_s30 + $0x20] sm:$0xff]  ;;  %s313_s27 = sshll.u32 %s691_s17, 4  ;;  %s742_s29 = scalar_lea.hbm %s792_s1, %s405_s25  ;;  %s744_s27 = int_to_ptr.vmem [resolvable:$true] %s313_s27 }
  0x37   : > { %v172_v5 = vmul.f32 2.0, %v140_v2  ;;  %v143_v8 = vld [vmem:[%s668_s30 + $0x28] sm:$0xff]  ;;  %v173_v9 = vmul.f32 2.0, %v141_v6  ;;  %v174_v10 = vmul.f32 2.0, %v142_v7  ;;  %v144_v12 = vld [vmem:[%s668_s30 + $0x30] sm:$0xff]  ;;  %v145_v13 = vld [vmem:[%s668_s30 + $0x38] sm:$0xff] }
  0x38   : > { %v175_v11 = vmul.f32 2.0, %v143_v8  ;;  %v202_v14 = vadd.f32 2.0, %v170_v3  ;;  %v203_v15 = vadd.f32 2.0, %v171_v4  ;;  %v176_v17 = vmul.f32 2.0, %v144_v12  ;;  %v146_v18 = vld [vmem:[%s668_s30 + $0x40] sm:$0xff]  ;;  %v147_v23 = vld [vmem:[%s668_s30 + $0x48] sm:$0xff] }
  0x39   : > { %v204_v16 = vadd.f32 2.0, %v172_v5  ;;  %v205_v19 = vadd.f32 2.0, %v173_v9  ;;  %v206_v20 = vadd.f32 2.0, %v174_v10  ;;  %v177_v22 = vmul.f32 2.0, %v145_v13  ;;  %v148_v24 = vld [vmem:[%s668_s30 + $0x50] sm:$0xff]  ;;  %v149_v29 = vld [vmem:[%s668_s30 + $0x58] sm:$0xff] }
  0x3a   : > { %v207_v21 = vadd.f32 2.0, %v175_v11  ;;  %v234_v25 = vmul.f32 %v202_v14, %v202_v14  ;;  %v235_v26 = vmul.f32 %v203_v15, %v203_v15  ;;  %v208_v28 = vadd.f32 2.0, %v176_v17  ;;  %v150_v30 = vld [vmem:[%s668_s30 + $0x60] sm:$0xff]  ;;  %v151_v31 = vld [vmem:[%s668_s30 + $0x68] sm:$0xff]  ;;  %v152_v36 = vld [vmem:[%s668_s30 + $0x70] sm:$0xff]  ;;  %s299_s2 = scalar_lea.sflag [#allocation4], %s662_s23 }
  0x3b   : > { %v236_v27 = vmul.f32 %v204_v16, %v204_v16  ;;  %v237_v32 = vmul.f32 %v205_v19, %v205_v19  ;;  %v238_v33 = vmul.f32 %v206_v20, %v206_v20  ;;  %v209_v35 = vadd.f32 2.0, %v177_v22  ;;  %v153_v41 = vld [vmem:[%s668_s30 + $0x78] sm:$0xff]  ;;  %v154_v50 = vld [vmem:[%s668_s30 + $0x80] sm:$0xff]  ;;  %v155_v55 = vld [vmem:[%s668_s30 + $0x88] sm:$0xff]  ;;  %s484_s3 = scalar_lea.vmem %s744_s27, 4096  ;;  %p801_p11 = scmp.ne.s32.totalorder %s797_s18, 0 }
  0x3c   : > { %v239_v34 = vmul.f32 %v207_v21, %v207_v21  ;;  %266 = vst [vmem:[%s691_s17] sm:$0xff] %v234_v25  ;;  %267 = vst [vmem:[%s691_s17 + $0x8] sm:$0xff] %v235_v26  ;;  %v240_v37 = vmul.f32 %v208_v28, %v208_v28  ;;  %v178_v38 = vmul.f32 2.0, %v146_v18  ;;  %v179_v39 = vmul.f32 2.0, %v147_v23  ;;  %v156_v56 = vld [vmem:[%s668_s30 + $0x90] sm:$0xff]  ;;  %v157_v61 = vld [vmem:[%s668_s30 + $0x98] sm:$0xff]  ;;  %p485_p10 = scmp.ne.s32.totalorder %s744_s27, %s484_s3  ;;  %s553_s4 = smov [#allocation5]  }
  0x3d   : > { %268 = vst [vmem:[%s691_s17 + $0x10] sm:$0xff] %v236_v27  ;;  %v180_v40 = vmul.f32 2.0, %v148_v24  ;;  %269 = vst [vmem:[%s691_s17 + $0x18] sm:$0xff] %v237_v32  ;;  %v241_v42 = vmul.f32 %v209_v35, %v209_v35  ;;  %v181_v43 = vmul.f32 2.0, %v149_v29  ;;  %v182_v44 = vmul.f32 2.0, %v150_v30  ;;  %v158_v62 = vld [vmem:[%s668_s30 + $0xa0] sm:$0xff] }
  0x3e   : > { %270 = vst [vmem:[%s691_s17 + $0x20] sm:$0xff] %v238_v33  ;;  %271 = vst [vmem:[%s691_s17 + $0x28] sm:$0xff] %v239_v34  ;;  %v183_v45 = vmul.f32 2.0, %v151_v31  ;;  %v210_v46 = vadd.f32 2.0, %v178_v38  ;;  %v211_v47 = vadd.f32 2.0, %v179_v39  ;;  %v184_v49 = vmul.f32 2.0, %v152_v36  ;;  %p486_p12 = pnand %p485_p10, %p801_p11 }
  0x3f   : > { %272 = vst [vmem:[%s691_s17 + $0x30] sm:$0xff] %v240_v37  ;;  %v212_v48 = vadd.f32 2.0, %v180_v40  ;;  %273 = vst [vmem:[%s691_s17 + $0x38] sm:$0xff] %v241_v42  ;;  %v213_v51 = vadd.f32 2.0, %v181_v43  ;;  %v214_v52 = vadd.f32 2.0, %v182_v44  ;;  %v185_v54 = vmul.f32 2.0, %v153_v41 }
  0x40   : > { %v215_v53 = vadd.f32 2.0, %v183_v45  ;;  %v242_v57 = vmul.f32 %v210_v46, %v210_v46  ;;  %v243_v58 = vmul.f32 %v211_v47, %v211_v47  ;;  %v216_v60 = vadd.f32 2.0, %v184_v49  ;;  %v159_v63 = vld [vmem:[%s668_s30 + $0xa8] sm:$0xff]  ;;  %v160_v4 = vld [vmem:[%s668_s30 + $0xb0] sm:$0xff]  ;;  %v161_v9 = vld [vmem:[%s668_s30 + $0xb8] sm:$0xff]  ;;  %p487_p4 = pneg %p486_p12  ;;  %s488_s5 = sshll.u32 %s553_s4, 4  ;;  %s489_s5 = int_to_ptr.vmem [resolvable:$false] %s488_s5 }
  0x41   : > { %v244_v59 = vmul.f32 %v212_v48, %v212_v48  ;;  %v245_v0 = vmul.f32 %v213_v51, %v213_v51  ;;  %v246_v1 = vmul.f32 %v214_v52, %v214_v52  ;;  %v217_v3 = vadd.f32 2.0, %v185_v54  ;;  %v162_v18 = vld [vmem:[%s668_s30 + $0xc0] sm:$0xff]  ;;  %v163_v23 = vld [vmem:[%s668_s30 + $0xc8] sm:$0xff]  ;;  %v164_v24 = vld [vmem:[%s668_s30 + $0xd0] sm:$0xff]  ;;  %s490_s11 = scalar_lea.vmem %s489_s5, 8192  ;;  %p491_p5 = scmp.lt.s32.totalorder %s744_s27, %s489_s5 }
  0x42   : > { %v247_v2 = vmul.f32 %v215_v53, %v215_v53  ;;  %274 = vst [vmem:[%s691_s17 + $0x40] sm:$0xff] %v242_v57  ;;  %275 = vst [vmem:[%s691_s17 + $0x48] sm:$0xff] %v243_v58  ;;  %v248_v5 = vmul.f32 %v216_v60, %v216_v60  ;;  %v186_v6 = vmul.f32 2.0, %v154_v50  ;;  %v187_v7 = vmul.f32 2.0, %v155_v55  ;;  %v165_v29 = vld [vmem:[%s668_s30 + $0xd8] sm:$0xff]  ;;  %v166_v30 = vld [vmem:[%s668_s30 + $0xe0] sm:$0xff]  ;;  %p492_p7 = scmp.lt.s32.totalorder %s490_s11, %s484_s3 }
  0x43   : > { %276 = vst [vmem:[%s691_s17 + $0x50] sm:$0xff] %v244_v59  ;;  %v188_v8 = vmul.f32 2.0, %v156_v56  ;;  %277 = vst [vmem:[%s691_s17 + $0x58] sm:$0xff] %v245_v0  ;;  %v249_v10 = vmul.f32 %v217_v3, %v217_v3  ;;  %v189_v11 = vmul.f32 2.0, %v157_v61  ;;  %v190_v12 = vmul.f32 2.0, %v158_v62  ;;  %v167_v31 = vld [vmem:[%s668_s30 + $0xe8] sm:$0xff] }
  0x44   : > { %278 = vst [vmem:[%s691_s17 + $0x60] sm:$0xff] %v246_v1  ;;  %279 = vst [vmem:[%s691_s17 + $0x68] sm:$0xff] %v247_v2  ;;  %v191_v13 = vmul.f32 2.0, %v159_v63  ;;  %v218_v14 = vadd.f32 2.0, %v186_v6  ;;  %v219_v15 = vadd.f32 2.0, %v187_v7  ;;  %v192_v17 = vmul.f32 2.0, %v160_v4  ;;  %p493_p8 = por %p492_p7, %p491_p5 }
  0x45   : > { %280 = vst [vmem:[%s691_s17 + $0x70] sm:$0xff] %v248_v5  ;;  %v220_v16 = vadd.f32 2.0, %v188_v8  ;;  %281 = vst [vmem:[%s691_s17 + $0x78] sm:$0xff] %v249_v10  ;;  %v221_v19 = vadd.f32 2.0, %v189_v11  ;;  %v222_v20 = vadd.f32 2.0, %v190_v12  ;;  %v193_v22 = vmul.f32 2.0, %v161_v9 }
  0x46   : > { %v223_v21 = vadd.f32 2.0, %v191_v13  ;;  %v250_v25 = vmul.f32 %v218_v14, %v218_v14  ;;  %v251_v26 = vmul.f32 %v219_v15, %v219_v15  ;;  %v224_v28 = vadd.f32 2.0, %v192_v17  ;;  %v168_v36 = vld [vmem:[%s668_s30 + $0xf0] sm:$0xff]  ;;  %v169_v41 = vld [vmem:[%s668_s30 + $0xf8] sm:$0xff]  ;;  %p494_p9 = pnand %p493_p8, %p487_p4 }
  0x47   : > { %v252_v27 = vmul.f32 %v220_v16, %v220_v16  ;;  %v253_v32 = vmul.f32 %v221_v19, %v221_v19  ;;  %v254_v33 = vmul.f32 %v222_v20, %v222_v20  ;;  %v225_v35 = vadd.f32 2.0, %v193_v22 }
  0x48   : > { %v255_v34 = vmul.f32 %v223_v21, %v223_v21  ;;  %282 = vst [vmem:[%s691_s17 + $0x80] sm:$0xff] %v250_v25  ;;  %283 = vst [vmem:[%s691_s17 + $0x88] sm:$0xff] %v251_v26  ;;  %v256_v37 = vmul.f32 %v224_v28, %v224_v28  ;;  %v194_v38 = vmul.f32 2.0, %v162_v18  ;;  %v195_v39 = vmul.f32 2.0, %v163_v23 }
  0x49   : > { %284 = vst [vmem:[%s691_s17 + $0x90] sm:$0xff] %v252_v27  ;;  %v196_v40 = vmul.f32 2.0, %v164_v24  ;;  %285 = vst [vmem:[%s691_s17 + $0x98] sm:$0xff] %v253_v32  ;;  %v257_v42 = vmul.f32 %v225_v35, %v225_v35  ;;  %v197_v43 = vmul.f32 2.0, %v165_v29  ;;  %v198_v44 = vmul.f32 2.0, %v166_v30 }
  0x4a   : > { %286 = vst [vmem:[%s691_s17 + $0xa0] sm:$0xff] %v254_v33  ;;  %287 = vst [vmem:[%s691_s17 + $0xa8] sm:$0xff] %v255_v34  ;;  %v199_v45 = vmul.f32 2.0, %v167_v31  ;;  %v226_v46 = vadd.f32 2.0, %v194_v38  ;;  %v227_v47 = vadd.f32 2.0, %v195_v39  ;;  %v200_v49 = vmul.f32 2.0, %v168_v36 }
  0x4b   : > { %288 = vst [vmem:[%s691_s17 + $0xb0] sm:$0xff] %v256_v37  ;;  %v228_v48 = vadd.f32 2.0, %v196_v40  ;;  %289 = vst [vmem:[%s691_s17 + $0xb8] sm:$0xff] %v257_v42  ;;  %v229_v50 = vadd.f32 2.0, %v197_v43  ;;  %v230_v51 = vadd.f32 2.0, %v198_v44  ;;  %v201_v53 = vmul.f32 2.0, %v169_v41 }
  0x4c   : > { %v231_v52 = vadd.f32 2.0, %v199_v45  ;;  %v258_v54 = vmul.f32 %v226_v46, %v226_v46  ;;  %v259_v55 = vmul.f32 %v227_v47, %v227_v47  ;;  %v232_v57 = vadd.f32 2.0, %v200_v49 }
  0x4d   : > { %v260_v56 = vmul.f32 %v228_v48, %v228_v48  ;;  %v261_v58 = vmul.f32 %v229_v50, %v229_v50  ;;  %v262_v59 = vmul.f32 %v230_v51, %v230_v51  ;;  %v233_v61 = vadd.f32 2.0, %v201_v53 }
  0x4e   : > { %v263_v60 = vmul.f32 %v231_v52, %v231_v52  ;;  %290 = vst [vmem:[%s691_s17 + $0xc0] sm:$0xff] %v258_v54  ;;  %291 = vst [vmem:[%s691_s17 + $0xc8] sm:$0xff] %v259_v55  ;;  %v264_v62 = vmul.f32 %v232_v57, %v232_v57 }
  0x4f   : > { %292 = vst [vmem:[%s691_s17 + $0xd0] sm:$0xff] %v260_v56  ;;  %293 = vst [vmem:[%s691_s17 + $0xd8] sm:$0xff] %v261_v58  ;;  %v265_v63 = vmul.f32 %v233_v61, %v233_v61 }
  0x50   : > { %294 = vst [vmem:[%s691_s17 + $0xe0] sm:$0xff] %v262_v59  ;;  %295 = vst [vmem:[%s691_s17 + $0xe8] sm:$0xff] %v263_v60 }
  0x51   : > { %296 = vst [vmem:[%s691_s17 + $0xf0] sm:$0xff] %v264_v62  ;;  %297 = vst [vmem:[%s691_s17 + $0xf8] sm:$0xff] %v265_v63 }
  0x52   : > { %497 = shalt.err (!%p494_p9)
}
  0x53   : > { %s498_s13 = scalar_lea.hbm %s742_s29, 4096  ;;  %s502_s20 = scalar_lea.hbm %s792_s1, 16384 }
  0x54   : > { %p499_p13 = scmp.ne.s32.totalorder %s742_s29, %s498_s13  ;;  %p503_p2 = scmp.lt.s32.totalorder %s742_s29, %s792_s1 }
  0x55   : > { %p504_p3 = scmp.lt.s32.totalorder %s502_s20, %s498_s13 }
  0x56   : > { %p500_p1 = pnand %p499_p13, %p801_p11 }
  0x57   : > { %p505_p6 = por %p504_p3, %p503_p2 }
  0x58   : > { %p501_p0 = pneg %p500_p1 }
  0x5a   : > { %p506_p10 = pnand %p505_p6, %p501_p0 }
  0x5c   : > { %509 = shalt.err (!%p506_p10)
}
  0x5d   : > { %s554_s24 = smov 512   ;;  %s555_s26 = smov 32  }
  0x5e   : > { %408 = dma.vmem_to_hbm [thread:$0]  (%p801_p11), %s744_s27, 4096, %s742_s29, %s299_s2, %s554_s24, %s554_s24, %s555_s26  }
  0x5f PF: > { %p419_p12 = scmp.ge.s32.totalorder %s548_s9, 2  ;;  %s328_s30 = sand.u32 1, %s536_s6  }
  0x60   : > { %p802_p4 = scmp.ne.s32.totalorder %s798_s19, 0  ;;  %s329_s17 = scalar_lea.sflag [#allocation4], %s328_s30 }
  0x62   : > { %p415_p5 = pnand %p419_p12, %p802_p4 }
  0x64   : > { %p416_p7 = pneg %p415_p5 }
  0x66   : > { %531 = dma.done.wait (%p416_p7), %s329_s17, 4096  }
  0x67   : > { %533 = vsyncadd (%p416_p7), %s329_s17, 4294963200  ;;  %p14_p8 = scmp.ge.s32.totalorder %s591_s12, 6   ;;  %s803_s6 = smov %s540_s7 }
  0x68   : > { %s804_s7 = smov %s544_s8  ;;  %s805_s8 = smov %s603_s15 }
  0x69   : > { %s806_s9 = smov %s591_s12  ;;  %16 = sbr.rel (!%p14_p8) target bundleno = 5 (0x5), region = 69 }
  0x6e   :  { %334 = vsyncpa [#allocation3], 1 }
  0x6f   :  { %336 = vsyncpa [#allocation3 + $0x1], 1 }
  0x70   :  { %337 = vsyncpa [#allocation4], 1 }
  0x71   :  { %339 = vsyncpa [#allocation4 + $0x1], 1 }

</bundles_post_ra>
